<compile_context>
chip_gen: v7x
topology: tpu7x:2x2x1
jax: 0.10.0
libtpu: 0.0.40
codegen_flags: <defaults>
</compile_context>

<pallas_src>
import jax
import jax.numpy as jnp
from jax.experimental import pallas as pl
from jax.experimental.pallas import tpu as pltpu


def _round_up(n, m):
    return ((n + m - 1) // m) * m


def mlp_kernel(x_ref, w1_ref, b1_ref, w2_ref, b2_ref, w3_ref, b3_ref, o_ref):
    # x tile: (TB, 2D) f32 -> bf16 for the MXU; accumulate in f32.
    x = x_ref[...].astype(jnp.bfloat16)

    # Layer 1: (TB, 2D) @ (2D, 4D) + b1; ReLU fused with the bf16 downcast
    # (max(round(x),0) == round(max(x,0)), so numerics match the f32-ReLU ref).
    h1 = jnp.maximum(
        (b1_ref[...] + jnp.dot(x, w1_ref[...],
                               preferred_element_type=jnp.float32)
         ).astype(jnp.bfloat16), 0)

    # Layer 2: (TB, 4D) @ (4D, 2D) + b2, ReLU (same fusion).
    h2 = jnp.maximum(
        (b2_ref[...] + jnp.dot(h1, w2_ref[...],
                               preferred_element_type=jnp.float32)
         ).astype(jnp.bfloat16), 0)

    # Layer 3 (padded to 8 output lanes): (TB, 2D) @ (2D, 8) + b3.
    out = b3_ref[...] + jnp.dot(h2, w3_ref[...],
                                preferred_element_type=jnp.float32)
    o_ref[...] = out.astype(o_ref.dtype)


def code_clone_detector_forward(x, params, *, block_b=4096):
    """x: (B, 2*input_dim) f32.  Returns (B, 2) f32 logits."""
    w1, b1, w2, b2, w3, b3 = params
    B, d_in = x.shape
    d_h2 = w2.shape[1]
    d_out = w3.shape[1]

    # --- pad final-layer outputs to 8 lanes (sublane-aligned; last block dim
    #     equals the full array dim, so only cheap masked vst on 8 f32/row) ---
    n_pad = max(_round_up(d_out, 8), 8)
    w3p = jnp.zeros((d_h2, n_pad), w3.dtype).at[:, :d_out].set(w3)
    b3p = jnp.zeros((1, n_pad), b3.dtype).at[:, :d_out].set(b3)

    # --- bf16 matmul operands (weights cast once; biases stay f32) ---
    w1b = w1.astype(jnp.bfloat16)
    w2b = w2.astype(jnp.bfloat16)
    w3b = w3p.astype(jnp.bfloat16)

    # --- batch tiling: big tile (beats per-step overhead) but >= ~4 grid steps
    #     so the parallel axis actually splits across v7x's two TensorCores.
    #     tb is always a multiple of 8 regardless of caller-supplied block_b. ---
    block_b = max(_round_up(block_b, 8), 8)
    tb = min(block_b, max(_round_up(pl.cdiv(B, 4), 8), 8))
    grid = (pl.cdiv(B, tb),)   # no wrapper-side pad: Pallas masks the boundary block

    def const_spec(shape):
        return pl.BlockSpec(shape, lambda i: (0,) * len(shape))

    out = pl.pallas_call(
        mlp_kernel,
        out_shape=jax.ShapeDtypeStruct((B, n_pad), jnp.float32),
        grid=grid,
        in_specs=[
            pl.BlockSpec((tb, d_in), lambda i: (i, 0)),   # x: tiled along batch
            const_spec(w1b.shape), const_spec(b1.shape),  # weights/biases resident
            const_spec(w2b.shape), const_spec(b2.shape),
            const_spec(w3b.shape), const_spec(b3p.shape),
        ],
        out_specs=pl.BlockSpec((tb, n_pad), lambda i: (i, 0)),
        compiler_params=pltpu.CompilerParams(
            dimension_semantics=("parallel",),            # shards across v7x's 2 TCs
        ),
    )(x, w1b, b1, w2b, b2, w3b, b3p)

    return out[:, :d_out]


def init_params(key, input_dim):
    """Deterministic synthetic init mimicking nn.Linear's U(-1/sqrt(fan_in), ...)."""
    d_in, d_h1, d_h2, d_out = 2 * input_dim, 4 * input_dim, 2 * input_dim, 2
    ks = jax.random.split(key, 6)

    def lin(kw, kb, fan_in, fan_out):
        bound = 1.0 / jnp.sqrt(fan_in)
        w = jax.random.uniform(kw, (fan_in, fan_out), jnp.float32, -bound, bound)
        b = jax.random.uniform(kb, (1, fan_out), jnp.float32, -bound, bound)
        return w, b

    w1, b1 = lin(ks[0], ks[1], d_in, d_h1)
    w2, b2 = lin(ks[2], ks[3], d_h1, d_h2)
    w3, b3 = lin(ks[4], ks[5], d_h2, d_out)
    return (w1, b1, w2, b2, w3, b3)


def reference_forward_bf16(x, params):
    """Reference with the same bf16-operand / f32-accumulate rounding as the kernel."""
    w1, b1, w2, b2, w3, b3 = params
    bf = lambda a: a.astype(jnp.bfloat16)
    h1 = jnp.maximum(jnp.dot(bf(x), bf(w1), preferred_element_type=jnp.float32) + b1, 0.0)
    h2 = jnp.maximum(jnp.dot(bf(h1), bf(w2), preferred_element_type=jnp.float32) + b2, 0.0)
    return jnp.dot(bf(h2), bf(w3), preferred_element_type=jnp.float32) + b3


def reference_forward_f32(x, params):
    w1, b1, w2, b2, w3, b3 = params
    h1 = jnp.maximum(x @ w1 + b1, 0.0)
    h2 = jnp.maximum(h1 @ w2 + b2, 0.0)
    return h2 @ w3 + b3


if __name__ == "__main__":
    input_dim = 32            # feature dim D; model input is 2*D = 64

    key = jax.random.PRNGKey(0)
    k_x, k_p, k_x2 = jax.random.split(key, 3)
    params = init_params(k_p, input_dim)

    # --- small batch (single grid step) ---
    batch = 8
    x = jax.random.normal(k_x, (batch, 2 * input_dim), jnp.float32)
    out = jax.block_until_ready(code_clone_detector_forward(x, params))
    assert out.shape == (batch, 2), out.shape
    ref_bf16 = reference_forward_bf16(x, params)
    ref_f32 = reference_forward_f32(x, params)
    assert jnp.allclose(out, ref_bf16, atol=1e-2, rtol=1e-2), "mismatch vs bf16 reference"
    assert jnp.allclose(out, ref_f32, atol=5e-2, rtol=5e-2), "mismatch vs f32 reference"

    # --- larger batch: exercises multi-step grid + masked boundary block (1000 % 256 != 0) ---
    batch2 = 1000
    x2 = jax.random.normal(k_x2, (batch2, 2 * input_dim), jnp.float32)
    out2 = jax.block_until_ready(code_clone_detector_forward(x2, params))
    assert out2.shape == (batch2, 2), out2.shape
    ref2 = reference_forward_bf16(x2, params)
    assert jnp.allclose(out2, ref2, atol=1e-2, rtol=1e-2), "mismatch vs reference (batched)"

    print("KERNEL_OK")
</pallas_src>

<mosaic_0001>
module attributes {stable_mosaic.version = 11 : i64} {
  func.func @mlp_kernel(%arg0: i32, %arg1: memref<8x64xf32, #tpu.memory_space<vmem>>, %arg2: memref<64x128xbf16, #tpu.memory_space<vmem>>, %arg3: memref<1x128xf32, #tpu.memory_space<vmem>>, %arg4: memref<128x64xbf16, #tpu.memory_space<vmem>>, %arg5: memref<1x64xf32, #tpu.memory_space<vmem>>, %arg6: memref<64x8xbf16, #tpu.memory_space<vmem>>, %arg7: memref<1x8xf32, #tpu.memory_space<vmem>>, %arg8: memref<8x8xf32, #tpu.memory_space<vmem>>) attributes {dimension_semantics = [#tpu.dimension_semantics<parallel>], iteration_bounds = array<i64: 1>, scalar_prefetch = 0 : i64, scratch_operands = 0 : i64, tpu.core_type = #tpu.core_type<tc>, window_params = [{transform_indices = @transform_0, window_bounds = array<i64: 8, 64>}, {pipeline_mode = #tpu.pipeline_mode<synchronous>, transform_indices = @transform_1, window_bounds = array<i64: 64, 128>}, {pipeline_mode = #tpu.pipeline_mode<synchronous>, transform_indices = @transform_2, window_bounds = array<i64: 1, 128>}, {pipeline_mode = #tpu.pipeline_mode<synchronous>, transform_indices = @transform_3, window_bounds = array<i64: 128, 64>}, {pipeline_mode = #tpu.pipeline_mode<synchronous>, transform_indices = @transform_4, window_bounds = array<i64: 1, 64>}, {pipeline_mode = #tpu.pipeline_mode<synchronous>, transform_indices = @transform_5, window_bounds = array<i64: 64, 8>}, {pipeline_mode = #tpu.pipeline_mode<synchronous>, transform_indices = @transform_6, window_bounds = array<i64: 1, 8>}, {transform_indices = @transform_7, window_bounds = array<i64: 8, 8>}]} {
    %c0 = arith.constant 0 : index
    %c0_0 = arith.constant 0 : index
    %0 = vector.load %arg1[%c0, %c0_0] : memref<8x64xf32, #tpu.memory_space<vmem>>, vector<8x64xf32>
    %1 = arith.truncf %0 : vector<8x64xf32> to vector<8x64xbf16>
    %c0_1 = arith.constant 0 : index
    %c0_2 = arith.constant 0 : index
    %2 = vector.load %arg3[%c0_1, %c0_2] : memref<1x128xf32, #tpu.memory_space<vmem>>, vector<1x128xf32>
    %c0_3 = arith.constant 0 : index
    %c0_4 = arith.constant 0 : index
    %3 = vector.load %arg2[%c0_3, %c0_4] : memref<64x128xbf16, #tpu.memory_space<vmem>>, vector<64x128xbf16>
    %cst = arith.constant dense<0.000000e+00> : vector<8x128xf32>
    %4 = tpu.matmul %1, %3, %cst {dimension_numbers = #tpu.dot_dimension_numbers<[1], [0], [0], [1], [0, 0, 1, 1], [], []>} : vector<8x64xbf16>, vector<64x128xbf16>, vector<8x128xf32> -> vector<8x128xf32>
    %5 = vector.broadcast %2 : vector<1x128xf32> to vector<8x128xf32>
    %6 = arith.addf %5, %4 : vector<8x128xf32>
    %7 = arith.truncf %6 : vector<8x128xf32> to vector<8x128xbf16>
    %cst_5 = arith.constant 0.000000e+00 : bf16
    %8 = vector.broadcast %cst_5 : bf16 to vector<8x128xbf16>
    %9 = arith.maximumf %7, %8 : vector<8x128xbf16>
    %c0_6 = arith.constant 0 : index
    %c0_7 = arith.constant 0 : index
    %10 = vector.load %arg5[%c0_6, %c0_7] : memref<1x64xf32, #tpu.memory_space<vmem>>, vector<1x64xf32>
    %c0_8 = arith.constant 0 : index
    %c0_9 = arith.constant 0 : index
    %11 = vector.load %arg4[%c0_8, %c0_9] : memref<128x64xbf16, #tpu.memory_space<vmem>>, vector<128x64xbf16>
    %cst_10 = arith.constant dense<0.000000e+00> : vector<8x64xf32>
    %12 = tpu.matmul %9, %11, %cst_10 {dimension_numbers = #tpu.dot_dimension_numbers<[1], [0], [0], [1], [0, 0, 1, 1], [], []>} : vector<8x128xbf16>, vector<128x64xbf16>, vector<8x64xf32> -> vector<8x64xf32>
    %13 = vector.broadcast %10 : vector<1x64xf32> to vector<8x64xf32>
    %14 = arith.addf %13, %12 : vector<8x64xf32>
    %15 = arith.truncf %14 : vector<8x64xf32> to vector<8x64xbf16>
    %cst_11 = arith.constant 0.000000e+00 : bf16
    %16 = vector.broadcast %cst_11 : bf16 to vector<8x64xbf16>
    %17 = arith.maximumf %15, %16 : vector<8x64xbf16>
    %c0_12 = arith.constant 0 : index
    %c0_13 = arith.constant 0 : index
    %18 = vector.load %arg7[%c0_12, %c0_13] : memref<1x8xf32, #tpu.memory_space<vmem>>, vector<1x8xf32>
    %c0_14 = arith.constant 0 : index
    %c0_15 = arith.constant 0 : index
    %19 = vector.load %arg6[%c0_14, %c0_15] : memref<64x8xbf16, #tpu.memory_space<vmem>>, vector<64x8xbf16>
    %cst_16 = arith.constant dense<0.000000e+00> : vector<8x8xf32>
    %20 = tpu.matmul %17, %19, %cst_16 {dimension_numbers = #tpu.dot_dimension_numbers<[1], [0], [0], [1], [0, 0, 1, 1], [], []>} : vector<8x64xbf16>, vector<64x8xbf16>, vector<8x8xf32> -> vector<8x8xf32>
    %21 = vector.broadcast %18 : vector<1x8xf32> to vector<8x8xf32>
    %22 = arith.addf %21, %20 : vector<8x8xf32>
    %c0_17 = arith.constant 0 : index
    %c0_18 = arith.constant 0 : index
    %23 = vector.load %arg8[%c0_17, %c0_18] : memref<8x8xf32, #tpu.memory_space<vmem>>, vector<8x8xf32>
    tpu.vector_store %arg8[%c0_17, %c0_18], %22 {strides = array<i32>} : memref<8x8xf32, #tpu.memory_space<vmem>>, vector<8x8xf32>,
    return
  }
  func.func @transform_0(%arg0: i32) -> (i32, i32) {
    %c0_i32 = arith.constant 0 : i32
    %c0_i32_0 = arith.constant 0 : i32
    return %arg0, %c0_i32 : i32, i32
  }
  func.func @transform_1(%arg0: i32) -> (i32, i32) {
    %c0_i32 = arith.constant 0 : i32
    %c0_i32_0 = arith.constant 0 : i32
    %c0_i32_1 = arith.constant 0 : i32
    return %c0_i32, %c0_i32_0 : i32, i32
  }
  func.func @transform_2(%arg0: i32) -> (i32, i32) {
    %c0_i32 = arith.constant 0 : i32
    %c0_i32_0 = arith.constant 0 : i32
    %c0_i32_1 = arith.constant 0 : i32
    return %c0_i32, %c0_i32_0 : i32, i32
  }
  func.func @transform_3(%arg0: i32) -> (i32, i32) {
    %c0_i32 = arith.constant 0 : i32
    %c0_i32_0 = arith.constant 0 : i32
    %c0_i32_1 = arith.constant 0 : i32
    return %c0_i32, %c0_i32_0 : i32, i32
  }
  func.func @transform_4(%arg0: i32) -> (i32, i32) {
    %c0_i32 = arith.constant 0 : i32
    %c0_i32_0 = arith.constant 0 : i32
    %c0_i32_1 = arith.constant 0 : i32
    return %c0_i32, %c0_i32_0 : i32, i32
  }
  func.func @transform_5(%arg0: i32) -> (i32, i32) {
    %c0_i32 = arith.constant 0 : i32
    %c0_i32_0 = arith.constant 0 : i32
    %c0_i32_1 = arith.constant 0 : i32
    return %c0_i32, %c0_i32_0 : i32, i32
  }
  func.func @transform_6(%arg0: i32) -> (i32, i32) {
    %c0_i32 = arith.constant 0 : i32
    %c0_i32_0 = arith.constant 0 : i32
    %c0_i32_1 = arith.constant 0 : i32
    return %c0_i32, %c0_i32_0 : i32, i32
  }
  func.func @transform_7(%arg0: i32) -> (i32, i32) {
    %c0_i32 = arith.constant 0 : i32
    %c0_i32_0 = arith.constant 0 : i32
    return %arg0, %c0_i32 : i32, i32
  }
}

</mosaic_0001>

<bundles_post_ra>
// kernel: tpu_custom_call.1
= control target key start
LH: loop header
LB: loop body
LE: loop exit
PB: predicated region body
PF: predicated region fallthrough
CT: control target
= control target key end

     0   :  { %v457_v1 = vmov 0.0   ;;  %vm458_vm0 = vmmov 0   ;;  %vm63_vm1 = vcmask 523264   ;;  %s597_s0 = inlined_call_operand.vmem [shape: f32[8,64], index: 0, kind: input, shape index: {}]   ;;  %s598_s1 = inlined_call_operand.vmem [shape: bf16[64,128], index: 1, kind: input, shape index: {}]   ;;  %s599_s2 = inlined_call_operand.vmem [shape: f32[1,128], index: 2, kind: input, shape index: {}]   ;;  %s600_s3 = inlined_call_operand.vmem [shape: bf16[128,64], index: 3, kind: input, shape index: {}]   ;;  %s601_s4 = inlined_call_operand.vmem [shape: f32[1,64], index: 4, kind: input, shape index: {}]   ;;  %s602_s5 = inlined_call_operand.vmem [shape: bf16[64,8], index: 5, kind: input, shape index: {}]   ;;  %s603_s6 = inlined_call_operand.vmem [shape: f32[1,8], index: 6, kind: input, shape index: {}]   ;;  %s604_s7 = inlined_call_operand.hbm [shape: f32[8,8], index: 7, kind: output, shape index: {}]  }
   0x1   :  { %v417_v0 = vld [vmem:[%s598_s1] sm:$0xff]   ;;  %369 = vmatprep.subr.bf16.mxu0 %v457_v1  ;;  %381 = vmatprep.subr.bf16.mxu1 %v457_v1  ;;  %v418_v2 = vld [vmem:[%s598_s1 + $0x8] sm:$0xff]   ;;  %v419_v4 = vld [vmem:[%s598_s1 + $0x10] sm:$0xff]  }
   0x2   :  { %370 = vmatpush3.bf16.msra.mxu0 %v417_v0  ;;  %377 = vmatprep.mubr.msk.bf16.mxu0 %vm458_vm0, %v457_v1  ;;  %v421_v3 = vld [vmem:[%s600_s3] sm:$0xff]   ;;  %v422_v5 = vld [vmem:[%s600_s3 + $0x8] sm:$0xff]   ;;  %v420_v6 = vld [vmem:[%s598_s1 + $0x18] sm:$0xff]  }
   0x3   :  { %371 = vmatprep.subr.bf16.mxu0 %v457_v1  ;;  %397 = vmatprep.mubr.msk.bf16.mxu1 %vm458_vm0, %v457_v1  ;;  %v28_v7 = vld [vmem:[%s597_s0] sm:$0xff]  ;;  %v423_v8 = vld [vmem:[%s600_s3 + $0x10] sm:$0xff]  }
   0x4   :  { %382 = vmatpush3.bf16.msra.mxu1 %v421_v3  ;;  %v29_v9 = vpack.c.bf16 %v28_v7, %v28_v7 }
   0x5   :  { %383 = vmatprep.subr.bf16.mxu1 %v457_v1 }
   0x6   :  { %372 = vmatpush3.bf16.msra.mxu0 %v418_v2 }
   0x7   :  { %373 = vmatprep.subr.bf16.mxu0 %v457_v1 }
   0x8   :  { %384 = vmatpush3.bf16.msra.mxu1 %v422_v5 }
   0x9   :  { %385 = vmatprep.subr.bf16.mxu1 %v457_v1 }
   0xa   :  { %374 = vmatpush3.bf16.msra.mxu0 %v419_v4 }
   0xb   :  { %375 = vmatprep.subr.bf16.mxu0 %v457_v1 }
   0xe   :  { %376 = vmatpush3.bf16.msra.mxu0 %v420_v6 }
   0xf   :  { %12 = vsyncpa [#allocation3], 0  ;;  %386 = vmatpush3.bf16.msra.mxu1 %v423_v8  ;;  %v424_v10 = vld [vmem:[%s600_s3 + $0x18] sm:$0xff]   ;;  %401 = vmatprep.subr.bf16.mxu0 %v457_v1  ;;  %v425_v11 = vld [vmem:[%s600_s3 + $0x20] sm:$0xff]   ;;  %v459_v24 = vmov 0   ;;  %s460_s14 = smov [#allocation2]  }
  0x10   :  { %387 = vmatprep.subr.bf16.mxu1 %v457_v1  ;;  %v426_v12 = vld [vmem:[%s600_s3 + $0x28] sm:$0xff]   ;;  %v427_v13 = vld [vmem:[%s600_s3 + $0x30] sm:$0xff]   ;;  %v428_v14 = vld [vmem:[%s600_s3 + $0x38] sm:$0xff]   ;;  %vm313_vm2 = vcmask 64512  }
  0x11   :  { %378 = vmatmul.mubr.msk.bf16.vlgmr.msra.gmra.mrb[0].mxu0 %vm63_vm1, %v29_v9  ;;  %v429_v15 = vld [vmem:[%s602_s5] sm:$0xff]   ;;  %v430_v16 = vld [vmem:[%s602_s5 + $0x8] sm:$0xff]   ;;  %v431_v26 = vld [vmem:[%s602_s5 + $0x10] sm:$0xff]  }
  0x12   :  { %409 = vmatprep.mubr.msk.bf16.mxu0 %vm458_vm0, %v457_v1  ;;  %402 = vmatpush3.bf16.msra.mxu0 %v429_v15  ;;  %v334_v17 = vld [vmem:[%s599_s2] ss:$0 sm:$0xff]  ;;  %v432_v27 = vld [vmem:[%s602_s5 + $0x18] sm:$0xff]   ;;  %s321_s5 = sshll.u32 %s460_s14, 4  ;;  %s322_s5 = int_to_ptr.vmem [resolvable:$true] %s321_s5 }
  0x13   :  { %388 = vmatpush3.bf16.msra.mxu1 %v424_v10  ;;  %403 = vmatprep.subr.bf16.mxu0 %v457_v1  ;;  %v343_v28 = vld [vmem:[%s601_s4] ss:$0 sm:$0xff]  ;;  %s433_s4 = scalar_lea.vmem %s322_s5, 128  ;;  %p438_p1 = scmp.lt.s32.totalorder %s322_s5, %s322_s5 }
  0x14   :  { %389 = vmatprep.subr.bf16.mxu1 %v457_v1  ;;  %v349_v36 = vld [vmem:[%s603_s6] ss:$0 sm:$0xff]  ;;  %p434_p0 = scmp.ne.s32.totalorder %s322_s5, %s433_s4  ;;  %p439_p2 = scmp.lt.s32.totalorder %s433_s4, %s433_s4 }
  0x16   :  { %404 = vmatpush3.bf16.msra.mxu0 %v430_v16  ;;  %p440_p3 = por %p439_p2, %p438_p1 }
  0x17   :  { %390 = vmatpush3.bf16.msra.mxu1 %v425_v11  ;;  %405 = vmatprep.subr.bf16.mxu0 %v457_v1 }
  0x18   :  { %391 = vmatprep.subr.bf16.mxu1 %v457_v1  ;;  %p441_p4 = pnand %p440_p3, %p434_p0 }
  0x1a   :  { %406 = vmatpush3.bf16.msra.mxu0 %v431_v26 }
  0x1b   :  { %392 = vmatpush3.bf16.msra.mxu1 %v426_v12  ;;  %407 = vmatprep.subr.bf16.mxu0 %v457_v1 }
  0x1c   :  { %393 = vmatprep.subr.bf16.mxu1 %v457_v1 }
  0x1e   :  { %408 = vmatpush3.bf16.msra.mxu0 %v432_v27 }
  0x1f   :  { %394 = vmatpush3.bf16.msra.mxu1 %v427_v13 }
  0x20   :  { %395 = vmatprep.subr.bf16.mxu1 %v457_v1 }
  0x23   :  { %396 = vmatpush3.bf16.msra.mxu1 %v428_v14 }
  0xe4   :  { %v101_v18 = vpop.f32.mrb[0].mxu0 }
  0xe5   :  { %v113_v19 = vadd.f32 %v334_v17, %v101_v18  ;;  %v379_v20 = vpop.f32.mrb[1].mxu0 }
  0xe6   :  { %v104_v21 = vpop.f32.mrb[2].mxu0 }
  0xe7   :  { %v114_v22 = vpack.c.bf16 %v113_v19, %v113_v19  ;;  %v380_v23 = vpop.f32.mrb[3].mxu0 }
  0xe9   :  { %v115_v25 = vmax.bf16 %v459_v24, %v114_v22 }
  0xeb   :  { %398 = vmatmul.mubr.bf16.vlgmr.msra.gmra.mrb[0].mxu1 %v115_v25 }
 0x1be   :  { %v215_v29 = vpop.f32.mrb[0].mxu1 }
 0x1bf   :  { %v227_v30 = vadd.f32 %v343_v28, %v215_v29  ;;  %v399_v31 = vpop.f32.mrb[1].mxu1 }
 0x1c0   :  { %v218_v32 = vpop.f32.mrb[2].mxu1 }
 0x1c1   :  { %v228_v33 = vpack.c.bf16 %v227_v30, %v227_v30  ;;  %v400_v34 = vpop.f32.mrb[3].mxu1 }
 0x1c3   :  { %v229_v35 = vmax.bf16 %v459_v24, %v228_v33 }
 0x1c5   :  { %410 = vmatmul.mubr.msk.bf16.vlgmr.msra.gmra.mrb[4].mxu0 %vm63_vm1, %v229_v35 }
 0x298   :  { %v300_v37 = vpop.f32.mrb[4].mxu0 }
 0x299   :  { %v312_v38 = vadd.f32 %v349_v36, %v300_v37  ;;  %v411_v39 = vpop.f32.mrb[5].mxu0 }
 0x29a   :  { %v303_v40 = vpop.f32.mrb[6].mxu0 }
 0x29b   :  { %v412_v41 = vpop.f32.mrb[7].mxu0  ;;  %314 = vst.msk [vmem:[#allocation2] sm:$0xff] %vm313_vm2, %v312_v38 }
 0x29c   :  { %444 = shalt.err (!%p441_p4)
}
 0x29d   :  { %s445_s6 = scalar_lea.hbm %s604_s7, 128 }
 0x29e   :  { %p446_p5 = scmp.ne.s32.totalorder %s604_s7, %s445_s6  ;;  %p449_p6 = scmp.lt.u32.totalorder %s445_s6, %s604_s7 }
 0x2a0   :  { %p451_p7 = pnand %p449_p6, %p446_p5 }
 0x2a2   :  { %454 = shalt.err (!%p451_p7)
}
 0x2a3   :  { %324 = dma.vmem_to_hbm [thread:$0]  %s322_s5, 128, %s604_s7, [#allocation3]  }
 0x2a4   :  { %455 = dma.done.wait [#allocation3], 128  }
 0x2a5   :  { %456 = vsyncadd [#allocation3], 4294967168 }
 0x2a6   :  { %328 = vsyncpa [#allocation3], 1 }

</bundles_post_ra>
